<compile_context>
chip_gen: v7x
topology: tpu7x:2x2x1
jax: 0.10.0
libtpu: 0.0.40
codegen_flags: <defaults>
</compile_context>

<pallas_src>
import functools

import jax
import jax.numpy as jnp
from jax.experimental import pallas as pl
from jax.experimental.pallas import tpu as pltpu

_EPS = 1e-5  # torch.nn.LayerNorm default eps


def _round_up(n, m):
    return ((n + m - 1) // m) * m


def _layernorm(x, eps=_EPS):
    mu = jnp.mean(x, axis=-1, keepdims=True)
    xc = x - mu
    var = jnp.mean(xc * xc, axis=-1, keepdims=True)
    return xc * jax.lax.rsqrt(var + eps)


def _silu(x):
    return x * jax.nn.sigmoid(x)


# ----------------------------- kernels ------------------------------------- #

def _transition_plain_kernel(x_ref, ln_w_ref, ln_b_ref, w1_ref, w2_ref, o_ref):
    """use_single_cond=False:  out = (silu(a)*b) @ W2.T,  [a|b] = LN(x) @ W1.T"""
    c_mid = w2_ref.shape[0]
    x = x_ref[...].astype(jnp.float32)
    # LayerNorm(c_x) with affine (f32 on the VPU/EUP).
    x_ln = _layernorm(x) * ln_w_ref[...] + ln_b_ref[...]
    h = x_ln.astype(w1_ref.dtype)              # bf16 MXU operand, f32 accumulate
    # Fused GLU matmul; the a/b split is lane-aligned when c_mid % 128 == 0.
    ab = jnp.dot(h, w1_ref[...], preferred_element_type=jnp.float32)
    c = _silu(ab[:, :c_mid]) * ab[:, c_mid:]
    out = jnp.dot(c.astype(w2_ref.dtype), w2_ref[...],
                  preferred_element_type=jnp.float32)
    o_ref[...] = out.astype(o_ref.dtype)


def _transition_cond_kernel(x_ref, sc_ref, ln_sc_w_ref, wsb_ref, bs_ref,
                            w1_ref, w2_ref, wz_ref, bz_ref, o_ref):
    """use_single_cond=True path (AdaptiveLayerNorm + AdaLNZero gating)."""
    c_x = x_ref.shape[-1]
    c_mid = w2_ref.shape[0]
    x = x_ref[...].astype(jnp.float32)
    sc = sc_ref[...].astype(jnp.float32)

    # AdaptiveLayerNorm
    x_ln = _layernorm(x)                                   # no affine
    sc_ln = _layernorm(sc) * ln_sc_w_ref[...]              # weight, no bias
    sb = jnp.dot(sc_ln.astype(wsb_ref.dtype), wsb_ref[...],
                 preferred_element_type=jnp.float32)       # fused [Ws | Wb]
    scale = sb[:, :c_x] + bs_ref[...]
    bias = sb[:, c_x:]
    h = jax.nn.sigmoid(scale) * x_ln + bias

    # Fused GLU matmul.
    ab = jnp.dot(h.astype(w1_ref.dtype), w1_ref[...],
                 preferred_element_type=jnp.float32)
    c = _silu(ab[:, :c_mid]) * ab[:, c_mid:]

    # AdaLNZero: sigmoid(adaptive_zero_cond(ORIGINAL sc)) * transition2(c)
    out = jnp.dot(c.astype(w2_ref.dtype), w2_ref[...],
                  preferred_element_type=jnp.float32)
    gate = jnp.dot(sc.astype(wz_ref.dtype), wz_ref[...],
                   preferred_element_type=jnp.float32) + bz_ref[...]
    o_ref[...] = (jax.nn.sigmoid(gate) * out).astype(o_ref.dtype)


# ----------------------------- chip-aware config ---------------------------- #

@functools.lru_cache(maxsize=None)
def _chip_config():
    """Returns (vmem_limit_bytes, single_tensorcore, max_row_tile)."""
    cap = 64 * 1024 * 1024  # conservative (v7x-like) fallback
    try:
        cap = int(pltpu.get_tpu_info().vmem_capacity_bytes)
    except Exception:
        pass
    single_tc = cap >= 96 * 1024 * 1024      # v5e/v6e: 128 MiB VMEM, one TC
    vmem_limit = min(cap * 3 // 4, 100 * 1024 * 1024)
    max_tile = 512 if single_tc else 384     # v7x keeps tiles under 64 MiB/TC
    return vmem_limit, single_tc, max_tile


def _choose_row_tile(rows, *, min_steps, max_tile):
    """Row tile: multiple of 8 (preferring 128), <= max_tile, producing at
    least `min_steps` grid steps, preferring exact divisors of `rows` so the
    wrapper never has to pad/slice the activations."""
    rows8 = _round_up(rows, 8)
    cap = min(max_tile, max(8, (rows8 // min_steps) // 8 * 8))
    step = 128 if cap >= 128 else 8
    cap = cap // step * step
    for t in range(cap, step - 1, -step):
        if rows % t == 0:
            return t
    return cap


def _resident_spec():
    # Whole-array operand kept resident in VMEM for the whole launch: copied
    # in once, never double-buffered per grid step.
    return pl.BlockSpec(memory_space=pltpu.MemorySpace.VMEM)


# ----------------------------- parameter prep ------------------------------- #

def prepare_params(params, *, use_single_cond, matmul_dtype=jnp.bfloat16):
    """One-time weight prep (bf16 casts, fused [Ws|Wb], (1, C) bias rows).

    Call once per model and reuse across forward calls so that per-call HBM
    traffic is only the activations (no weight re-cast / re-concat kernels).
    """
    c_x = params["w1_T"].shape[0]
    prep = {
        "w1": jnp.asarray(params["w1_T"], matmul_dtype),   # (c_x, 2*c_mid)
        "w2": jnp.asarray(params["w2_T"], matmul_dtype),   # (c_mid, c_x)
    }
    if use_single_cond:
        c_s = params["ln_sc_w"].shape[0]
        prep["ln_sc_w"] = jnp.asarray(params["ln_sc_w"],
                                      jnp.float32).reshape(1, c_s)
        prep["wsb"] = jnp.concatenate([params["ws_T"], params["wb_T"]],
                                      axis=1).astype(matmul_dtype)
        prep["bs"] = jnp.asarray(params["bs"], jnp.float32).reshape(1, c_x)
        prep["wz"] = jnp.asarray(params["wz_T"], matmul_dtype)
        prep["bz"] = jnp.asarray(params["bz"], jnp.float32).reshape(1, c_x)
    else:
        prep["ln_w"] = jnp.asarray(params["ln_w"], jnp.float32).reshape(1, c_x)
        prep["ln_b"] = jnp.asarray(params["ln_b"], jnp.float32).reshape(1, c_x)
    return prep


# ----------------------------- wrapper -------------------------------------- #

def diffusion_transition(x, single_cond, prep, *, use_single_cond):
    """x: [B, S, c_x]; single_cond: [B, S, c_s] or None; prep: prepare_params()."""
    B, S, c_x = x.shape
    c_mid = prep["w2"].shape[0]
    rows = B * S

    vmem_limit, single_tc, max_tile = _chip_config()
    row_tile = _choose_row_tile(rows, min_steps=1 if single_tc else 2,
                                max_tile=max_tile)
    rows_pad = _round_up(rows, row_tile)
    pad = rows_pad - rows

    x2 = x.reshape(rows, c_x)
    if pad:  # only for odd row counts; padded zero rows stay finite through LN
        x2 = jnp.pad(x2, ((0, pad), (0, 0)))

    grid = (rows_pad // row_tile,)
    row_spec = lambda C: pl.BlockSpec((row_tile, C), lambda i: (i, 0))
    out_shape = jax.ShapeDtypeStruct((rows_pad, c_x), x.dtype)

    cparams = pltpu.CompilerParams(
        dimension_semantics=("parallel",),
        vmem_limit_bytes=int(vmem_limit))

    wbytes = jnp.dtype(prep["w1"].dtype).itemsize
    io_bytes = jnp.dtype(x.dtype).itemsize
    glu_flops = 6 * rows_pad * c_x * c_mid             # W1 + W2 matmuls
    glu_trans = rows_pad * c_mid                        # SiLU sigmoids

    # TODO(synk): for bf16 surrounding models, pass x/single_cond/out in bf16
    # (LN math already stays f32 in-kernel) to halve activation HBM/VMEM.

    if not use_single_cond:
        cost = pl.CostEstimate(
            flops=glu_flops,
            transcendentals=glu_trans,
            bytes_accessed=2 * rows_pad * c_x * io_bytes
            + (prep["w1"].size + prep["w2"].size) * wbytes
            + (prep["ln_w"].size + prep["ln_b"].size) * 4)
        out = pl.pallas_call(
            _transition_plain_kernel,
            out_shape=out_shape,
            grid=grid,
            in_specs=[row_spec(c_x),
                      _resident_spec(),     # ln_w
                      _resident_spec(),     # ln_b
                      _resident_spec(),     # w1 (fused GLU halves)
                      _resident_spec()],    # w2
            out_specs=row_spec(c_x),
            compiler_params=cparams,
            cost_estimate=cost,
        )(x2, prep["ln_w"], prep["ln_b"], prep["w1"], prep["w2"])
    else:
        c_s = single_cond.shape[-1]
        sc2 = single_cond.reshape(rows, c_s)
        if pad:
            sc2 = jnp.pad(sc2, ((0, pad), (0, 0)))
        cost = pl.CostEstimate(
            flops=glu_flops + 6 * rows_pad * c_s * c_x,      # [Ws|Wb] + Wz
            transcendentals=glu_trans + 2 * rows_pad * c_x,  # scale & gate
            bytes_accessed=2 * rows_pad * c_x * io_bytes
            + rows_pad * c_s * io_bytes
            + (prep["w1"].size + prep["w2"].size
               + prep["wsb"].size + prep["wz"].size) * wbytes
            + (prep["ln_sc_w"].size + prep["bs"].size + prep["bz"].size) * 4)
        out = pl.pallas_call(
            _transition_cond_kernel,
            out_shape=out_shape,
            grid=grid,
            in_specs=[row_spec(c_x),
                      row_spec(c_s),
                      _resident_spec(),     # ln_sc_w
                      _resident_spec(),     # wsb = [Ws | Wb]
                      _resident_spec(),     # bs
                      _resident_spec(),     # w1
                      _resident_spec(),     # w2
                      _resident_spec(),     # wz
                      _resident_spec()],    # bz
            out_specs=row_spec(c_x),
            compiler_params=cparams,
            cost_estimate=cost,
        )(x2, sc2, prep["ln_sc_w"], prep["wsb"], prep["bs"],
          prep["w1"], prep["w2"], prep["wz"], prep["bz"])

    if pad:
        out = out[:rows]
    return out.reshape(B, S, c_x)


# ----------------------------- reference (pure JAX, f32) -------------------- #

def diffusion_transition_ref(x, single_cond, params, *, use_single_cond):
    x = x.astype(jnp.float32)
    if not use_single_cond:
        h = _layernorm(x) * params["ln_w"] + params["ln_b"]
    else:
        sc = single_cond.astype(jnp.float32)
        sc_ln = _layernorm(sc) * params["ln_sc_w"]
        scale = sc_ln @ params["ws_T"] + params["bs"]
        bias = sc_ln @ params["wb_T"]
        h = jax.nn.sigmoid(scale) * _layernorm(x) + bias
    y = h @ params["w1_T"]
    a, b = jnp.split(y, 2, axis=-1)
    c = _silu(a) * b
    out = c @ params["w2_T"]
    if use_single_cond:
        cond = single_cond.astype(jnp.float32) @ params["wz_T"] + params["bz"]
        out = jax.nn.sigmoid(cond) * out
    return out


# ----------------------------- params / main -------------------------------- #

def make_params(key, c_x, c_s, factor):
    ks = jax.random.split(key, 10)
    c_mid = factor * c_x
    scale = 0.1
    return {
        # use_single_cond=False LayerNorm affine
        "ln_w": jnp.ones((c_x,), jnp.float32),
        "ln_b": jnp.zeros((c_x,), jnp.float32),
        # use_single_cond=True params
        "ln_sc_w": jnp.ones((c_s,), jnp.float32),
        "ws_T": scale * jax.random.normal(ks[0], (c_s, c_x), jnp.float32),
        "bs": scale * jax.random.normal(ks[1], (c_x,), jnp.float32),
        "wb_T": scale * jax.random.normal(ks[2], (c_s, c_x), jnp.float32),
        "wz_T": scale * jax.random.normal(ks[3], (c_s, c_x), jnp.float32),
        "bz": scale * jax.random.normal(ks[4], (c_x,), jnp.float32),
        # transition1 (bias=False): weight (2*f*c_x, c_x) -> pass transposed
        "w1_T": scale * jax.random.normal(ks[5], (c_x, 2 * c_mid), jnp.float32),
        # AdaLNZero.transition2 (bias=False): weight (c_x, f*c_x) -> transposed
        "w2_T": scale * jax.random.normal(ks[6], (c_mid, c_x), jnp.float32),
    }


if __name__ == "__main__":
    key = jax.random.PRNGKey(0)
    B, S = 2, 8
    c_x, c_s, factor = 32, 16, 2

    kx, ksc, kp = jax.random.split(key, 3)
    x = jax.random.normal(kx, (B, S, c_x), jnp.float32)
    single_cond = jax.random.normal(ksc, (B, S, c_s), jnp.float32)
    params = make_params(kp, c_x, c_s, factor)

    # bf16 MXU operands vs f32 reference -> compare with bf16-appropriate tol.
    atol = rtol = 3e-2

    # Path 1: use_single_cond=False (module default)
    prep_plain = prepare_params(params, use_single_cond=False)
    out_plain = diffusion_transition(x, None, prep_plain, use_single_cond=False)
    out_plain = jax.block_until_ready(out_plain)
    ref_plain = diffusion_transition_ref(x, None, params, use_single_cond=False)
    assert out_plain.shape == (B, S, c_x)
    assert jnp.allclose(out_plain, ref_plain, atol=atol, rtol=rtol)

    # Path 2: use_single_cond=True
    prep_cond = prepare_params(params, use_single_cond=True)
    out_cond = diffusion_transition(x, single_cond, prep_cond,
                                    use_single_cond=True)
    out_cond = jax.block_until_ready(out_cond)
    ref_cond = diffusion_transition_ref(x, single_cond, params,
                                        use_single_cond=True)
    assert out_cond.shape == (B, S, c_x)
    assert jnp.allclose(out_cond, ref_cond, atol=atol, rtol=rtol)

    print("KERNEL_OK")
</pallas_src>

<mosaic_0001>
module attributes {stable_mosaic.version = 11 : i64} {
  func.func @_transition_plain_kernel(%arg0: i32, %arg1: memref<8x32xf32, #tpu.memory_space<vmem>>, %arg2: memref<1x32xf32, #tpu.memory_space<vmem>>, %arg3: memref<1x32xf32, #tpu.memory_space<vmem>>, %arg4: memref<32x128xbf16, #tpu.memory_space<vmem>>, %arg5: memref<64x32xbf16, #tpu.memory_space<vmem>>, %arg6: memref<8x32xf32, #tpu.memory_space<vmem>>) attributes {dimension_semantics = [#tpu.dimension_semantics<parallel>], iteration_bounds = array<i64: 2>, scalar_prefetch = 0 : i64, scratch_operands = 0 : i64, tpu.core_type = #tpu.core_type<tc>, window_params = [{transform_indices = @transform_0, window_bounds = array<i64: 8, 32>}, {pipeline_mode = #tpu.pipeline_mode<synchronous>, transform_indices = @transform_1, window_bounds = array<i64: 1, 32>}, {pipeline_mode = #tpu.pipeline_mode<synchronous>, transform_indices = @transform_2, window_bounds = array<i64: 1, 32>}, {pipeline_mode = #tpu.pipeline_mode<synchronous>, transform_indices = @transform_3, window_bounds = array<i64: 32, 128>}, {pipeline_mode = #tpu.pipeline_mode<synchronous>, transform_indices = @transform_4, window_bounds = array<i64: 64, 32>}, {transform_indices = @transform_5, window_bounds = array<i64: 8, 32>}]} {
    %c0 = arith.constant 0 : index
    %c0_0 = arith.constant 0 : index
    %0 = vector.load %arg1[%c0, %c0_0] : memref<8x32xf32, #tpu.memory_space<vmem>>, vector<8x32xf32>
    %cst = arith.constant dense<0.000000e+00> : vector<8xf32>
    %1 = vector.multi_reduction <add>, %0, %cst [1] : vector<8x32xf32> to vector<8xf32>
    %2 = vector.shape_cast %1 : vector<8xf32> to vector<8x1xf32>
    %cst_1 = arith.constant 3.200000e+01 : f32
    %3 = vector.broadcast %cst_1 : f32 to vector<8x1xf32>
    %4 = arith.divf %2, %3 : vector<8x1xf32>
    %5 = vector.broadcast %4 : vector<8x1xf32> to vector<8x32xf32>
    %6 = arith.subf %0, %5 : vector<8x32xf32>
    %7 = arith.mulf %6, %6 : vector<8x32xf32>
    %cst_2 = arith.constant dense<0.000000e+00> : vector<8xf32>
    %8 = vector.multi_reduction <add>, %7, %cst_2 [1] : vector<8x32xf32> to vector<8xf32>
    %9 = vector.shape_cast %8 : vector<8xf32> to vector<8x1xf32>
    %cst_3 = arith.constant 3.200000e+01 : f32
    %10 = vector.broadcast %cst_3 : f32 to vector<8x1xf32>
    %11 = arith.divf %9, %10 : vector<8x1xf32>
    %cst_4 = arith.constant 9.99999974E-6 : f32
    %12 = vector.broadcast %cst_4 : f32 to vector<8x1xf32>
    %13 = arith.addf %11, %12 : vector<8x1xf32>
    %14 = math.rsqrt %13 : vector<8x1xf32>
    %15 = vector.broadcast %14 : vector<8x1xf32> to vector<8x32xf32>
    %16 = arith.mulf %6, %15 : vector<8x32xf32>
    %c0_5 = arith.constant 0 : index
    %c0_6 = arith.constant 0 : index
    %17 = vector.load %arg2[%c0_5, %c0_6] : memref<1x32xf32, #tpu.memory_space<vmem>>, vector<1x32xf32>
    %18 = vector.broadcast %17 : vector<1x32xf32> to vector<8x32xf32>
    %19 = arith.mulf %16, %18 : vector<8x32xf32>
    %c0_7 = arith.constant 0 : index
    %c0_8 = arith.constant 0 : index
    %20 = vector.load %arg3[%c0_7, %c0_8] : memref<1x32xf32, #tpu.memory_space<vmem>>, vector<1x32xf32>
    %21 = vector.broadcast %20 : vector<1x32xf32> to vector<8x32xf32>
    %22 = arith.addf %19, %21 : vector<8x32xf32>
    %23 = arith.truncf %22 : vector<8x32xf32> to vector<8x32xbf16>
    %c0_9 = arith.constant 0 : index
    %c0_10 = arith.constant 0 : index
    %24 = vector.load %arg4[%c0_9, %c0_10] : memref<32x128xbf16, #tpu.memory_space<vmem>>, vector<32x128xbf16>
    %cst_11 = arith.constant dense<0.000000e+00> : vector<8x128xf32>
    %25 = tpu.matmul %23, %24, %cst_11 {dimension_numbers = #tpu.dot_dimension_numbers<[1], [0], [0], [1], [0, 0, 1, 1], [], []>} : vector<8x32xbf16>, vector<32x128xbf16>, vector<8x128xf32> -> vector<8x128xf32>
    %26 = vector.extract_strided_slice %25 {offsets = [0, 0], sizes = [8, 64], strides = [1, 1]} : vector<8x128xf32> to vector<8x64xf32>
    %27 = arith.negf %26 : vector<8x64xf32>
    %28 = math.exp %27 : vector<8x64xf32>
    %cst_12 = arith.constant 1.000000e+00 : f32
    %29 = vector.broadcast %cst_12 : f32 to vector<8x64xf32>
    %30 = arith.addf %29, %28 : vector<8x64xf32>
    %31 = arith.divf %29, %30 : vector<8x64xf32>
    %32 = arith.mulf %26, %31 : vector<8x64xf32>
    %33 = vector.extract_strided_slice %25 {offsets = [0, 64], sizes = [8, 64], strides = [1, 1]} : vector<8x128xf32> to vector<8x64xf32>
    %34 = arith.mulf %32, %33 : vector<8x64xf32>
    %35 = arith.truncf %34 : vector<8x64xf32> to vector<8x64xbf16>
    %c0_13 = arith.constant 0 : index
    %c0_14 = arith.constant 0 : index
    %36 = vector.load %arg5[%c0_13, %c0_14] : memref<64x32xbf16, #tpu.memory_space<vmem>>, vector<64x32xbf16>
    %cst_15 = arith.constant dense<0.000000e+00> : vector<8x32xf32>
    %37 = tpu.matmul %35, %36, %cst_15 {dimension_numbers = #tpu.dot_dimension_numbers<[1], [0], [0], [1], [0, 0, 1, 1], [], []>} : vector<8x64xbf16>, vector<64x32xbf16>, vector<8x32xf32> -> vector<8x32xf32>
    %c0_16 = arith.constant 0 : index
    %c0_17 = arith.constant 0 : index
    %38 = vector.load %arg6[%c0_16, %c0_17] : memref<8x32xf32, #tpu.memory_space<vmem>>, vector<8x32xf32>
    tpu.vector_store %arg6[%c0_16, %c0_17], %37 {strides = array<i32>} : memref<8x32xf32, #tpu.memory_space<vmem>>, vector<8x32xf32>,
    return
  }
  func.func @transform_0(%arg0: i32) -> (i32, i32) {
    %c0_i32 = arith.constant 0 : i32
    %c0_i32_0 = arith.constant 0 : i32
    return %arg0, %c0_i32 : i32, i32
  }
  func.func @transform_1(%arg0: i32) -> (i32, i32) {
    %c0_i32 = arith.constant 0 : i32
    %c0_i32_0 = arith.constant 0 : i32
    %c0_i32_1 = arith.constant 0 : i32
    return %c0_i32, %c0_i32_0 : i32, i32
  }
  func.func @transform_2(%arg0: i32) -> (i32, i32) {
    %c0_i32 = arith.constant 0 : i32
    %c0_i32_0 = arith.constant 0 : i32
    %c0_i32_1 = arith.constant 0 : i32
    return %c0_i32, %c0_i32_0 : i32, i32
  }
  func.func @transform_3(%arg0: i32) -> (i32, i32) {
    %c0_i32 = arith.constant 0 : i32
    %c0_i32_0 = arith.constant 0 : i32
    %c0_i32_1 = arith.constant 0 : i32
    return %c0_i32, %c0_i32_0 : i32, i32
  }
  func.func @transform_4(%arg0: i32) -> (i32, i32) {
    %c0_i32 = arith.constant 0 : i32
    %c0_i32_0 = arith.constant 0 : i32
    %c0_i32_1 = arith.constant 0 : i32
    return %c0_i32, %c0_i32_0 : i32, i32
  }
  func.func @transform_5(%arg0: i32) -> (i32, i32) {
    %c0_i32 = arith.constant 0 : i32
    %c0_i32_0 = arith.constant 0 : i32
    return %arg0, %c0_i32 : i32, i32
  }
}

</mosaic_0001>

<bundles_post_ra>
// kernel: tpu_custom_call.1
= control target key start
LH: loop header
LB: loop body
LE: loop exit
PB: predicated region body
PF: predicated region fallthrough
CT: control target
= control target key end

     0   :  { %10 = vsyncpa [#allocation3], 0  ;;  %s805_s0 = inlined_call_operand.vmem [shape: f32[16,32], index: 0, kind: input, shape index: {}]   ;;  %s806_s1 = inlined_call_operand.vmem [shape: f32[1,32], index: 1, kind: input, shape index: {}]   ;;  %s807_s2 = inlined_call_operand.vmem [shape: f32[1,32], index: 2, kind: input, shape index: {}]   ;;  %s808_s3 = inlined_call_operand.vmem [shape: bf16[32,128], index: 3, kind: input, shape index: {}]   ;;  %s809_s4 = inlined_call_operand.vmem [shape: bf16[64,32], index: 4, kind: input, shape index: {}]   ;;  %s810_s5 = inlined_call_operand.hbm [shape: f32[16,32], index: 5, kind: output, shape index: {}]  }
   0x1   :  { %12 = vsyncpa [#allocation3 + $0x1], 0  ;;  %s677_s18 = smov 0   ;;  %s679_s19 = smov 0  }
   0x2   :  { %s681_s20 = smov 0   ;;  %s683_s21 = smov 0  }
   0x3 LB: > { %s698_s22 = sadd.s32 4294967295, %s641_s21   ;;  %s476_s23 = sadd.s32 4294967294, %s641_s21   ;;  %s641_s21 = sphi %s683_s21, %s816_s21   ;;  %s637_s20 = sphi %s681_s20, %s815_s20   ;;  %s633_s19 = sphi %s679_s19, %s814_s19   ;;  %s629_s18 = sphi %s677_s18, %s813_s18  }
   0x4   : > { %s702_s24 = sadd.s32 1, %s641_s21   ;;  %s135_s25 = sadd.s32 1, %s637_s20 }
   0x5   : > { %s132_s26 = ssub.s32 %s641_s21, %s702_s24  ;;  %p145_p0 = scmp.ne.s32.totalorder %s637_s20, %s633_s19 }
   0x6   : > { %p133_p1 = scmp.eq.s32.totalorder %s132_s26, 0  ;;  %p146_p2 = scmp.eq.s32.totalorder %s698_s22, 1 }
   0x7   : > { %p151_p3 = scmp.ne.s32.totalorder %s633_s19, %s629_s18  ;;  %p152_p4 = scmp.eq.s32.totalorder %s476_s23, 1 }
   0x8   : > { %s713_s27 = scalar_select %p133_p1, %s637_s20, %s135_s25  }
   0x9   : > { %p715_p5 = por %p146_p2, %p145_p0  ;;  %p719_p6 = por %p152_p4, %p151_p3 }
   0xa   : > { %p479_p7 = scmp.ge.s32.totalorder %s641_s21, 1  ;;  %p189_p8 = scmp.lt.s32.totalorder %s641_s21, 3 }
   0xc   : > { %p190_p9 = pnand %p479_p7, %p189_p8 }
   0xd   : > { %p216_p10 = scmp.lt.s32.totalorder (!%p190_p9), %s698_s22, 1  ;;  %vm222_vm0 = vcmask (!%p190_p9), 261120   ;;  %v567_v7 = vld [vmem:[%s808_s3] sm:$0xff] (!%p190_p9)   ;;  %v643_v8 = vmov (!%p190_p9), 0.0   ;;  %v568_v9 = vld [vmem:[%s808_s3 + $0x8] sm:$0xff] (!%p190_p9)   ;;  %vm644_vm1 = vmmov (!%p190_p9), 0  }
   0xe   : > { %193 = sbr.rel (%p190_p9) target bundleno = 899 (0x383), region = 40  ;;  %505 = vmatprep.subr.bf16.mxu0 (!%p190_p9), %v643_v8  ;;  %513 = vmatprep.subr.bf16.mxu1 (!%p190_p9), %v643_v8  ;;  %v482_v14 = vld [vmem:[%s806_s1] ss:$0 sm:$0xff] (!%p190_p9)  ;;  %v570_v21 = vld [vmem:[%s809_s4 + $0x8] sm:$0xff] (!%p190_p9)   ;;  %v571_v22 = vld [vmem:[%s809_s4 + $0x10] sm:$0xff] (!%p190_p9)   ;;  %s645_s10 = smov (!%p190_p9), 64  }
   0xf   : > { %506 = vmatpush3.bf16.msra.mxu0 (!%p190_p9), %v567_v7  ;;  %509 = vmatprep.mubr.msk.bf16.mxu0 (!%p190_p9), %vm644_vm1, %v643_v8  ;;  %v483_v16 = vld [vmem:[%s807_s2] ss:$0 sm:$0xff] (!%p190_p9)  ;;  %v572_v23 = vld [vmem:[%s809_s4 + $0x18] sm:$0xff] (!%p190_p9)   ;;  %vm358_vm2 = vcmask (!%p190_p9), 523264   ;;  %s213_s11 = sand.u32 (!%p190_p9), 1, %s633_s19   ;;  %s494_s13 = sshll.u32 (!%p190_p9), %s698_s22, 7 }
  0x10   : > { %507 = vmatprep.subr.bf16.mxu0 (!%p190_p9), %v643_v8  ;;  %521 = vmatprep.mubr.msk.bf16.mxu1 (!%p190_p9), %vm644_vm1, %v643_v8  ;;  %v569_v20 = vld [vmem:[%s809_s4] sm:$0xff] (!%p190_p9)   ;;  %s480_s12 = sshll.u32 (!%p190_p9), %s213_s11, 3  ;;  %s762_s23 = scalar_lea.hbm (!%p190_p9), %s810_s5, %s494_s13 }
  0x11   : > { %514 = vmatpush3.bf16.msra.mxu1 (!%p190_p9), %v569_v20  ;;  %s215_s14 = scalar_lea.vmem (!%p190_p9), [#allocation2], %s480_s12  ;;  %s404_s25 = scalar_lea.sflag (!%p190_p9), [#allocation3], %s213_s11 }
  0x12   : > { %515 = vmatprep.subr.bf16.mxu1 (!%p190_p9), %v643_v8  ;;  %s417_s15 = sshll.u32 (!%p190_p9), %s215_s14, 4  ;;  %s764_s15 = int_to_ptr.vmem [resolvable:$true] %s417_s15 }
  0x13   : > { %508 = vmatpush3.bf16.msra.mxu0 (!%p190_p9), %v568_v9  ;;  %s579_s26 = scalar_lea.vmem (!%p190_p9), %s764_s15, 128 }
  0x14   : > { %p580_p11 = scmp.ne.s32.totalorder (!%p190_p9), %s764_s15, %s579_s26 }
  0x15   : > { %s217_s30 = scalar_select %p216_p10, %s698_s22, 1  ;;  %516 = vmatpush3.bf16.msra.mxu1 %v570_v21 }
  0x16   : > { %517 = vmatprep.subr.bf16.mxu1 %v643_v8  ;;  %p581_p12 = pnand %p580_p11, %p715_p5  ;;  %s646_s22 = smov [#allocation2]  }
  0x17   : > { %s481_s6 = sshll.u32 %s217_s30, 3  ;;  %s583_s30 = sshll.u32 %s646_s22, 4  ;;  %s584_s30 = int_to_ptr.vmem [resolvable:$false] %s583_s30 }
  0x18   : > { %s219_s9 = scalar_lea.vmem %s805_s0, %s481_s6  ;;  %p582_p13 = pneg %p581_p12 }
  0x19   : > { %v221_v0 = vld [vmem:[%s219_s9] sm:$0xff]  ;;  %518 = vmatpush3.bf16.msra.mxu1 %v571_v22  ;;  %s585_s6 = scalar_lea.vmem %s584_s30, 256  ;;  %p586_p0 = scmp.lt.s32.totalorder %s764_s15, %s584_s30 }
  0x1a   : > { %v223_v1 = vsel %vm222_vm0, %v221_v0, 0.0  ;;  %519 = vmatprep.subr.bf16.mxu1 %v643_v8  ;;  %p587_p1 = scmp.lt.s32.totalorder %s585_s6, %s579_s26 }
  0x1b   : > { %224 = vadd.xlane.f32.xlu0 %v223_v1 }
  0x1c   : > { %p588_p2 = por %p587_p1, %p586_p0 }
  0x1d   : > { %520 = vmatpush3.bf16.msra.mxu1 %v572_v23 }
  0x1e   : > { %p589_p3 = pnand %p588_p2, %p582_p13 }
  0xa8   : > { %v225_v2 = vpop.xlane.xlu0 %224 }
  0xa9   : > { %v227_v3 = vmul.f32 0.03125, %v225_v2 }
  0xab   : > { %v228_v4 = vsub.f32 %v221_v0, %v227_v3 }
  0xad   : > { %v229_v5 = vmul.f32 %v228_v4, %v228_v4 }
  0xaf   : > { %v230_v6 = vsel %vm222_vm0, %v229_v5, 0.0 }
  0xb0   : > { %231 = vadd.xlane.f32.xlu0 %v230_v6 }
 0x13d   : > { %v232_v10 = vpop.xlane.xlu0 %231 }
 0x13e   : > { %v233_v11 = vmul.f32 0.03125, %v232_v10 }
 0x140   : > { %v234_v12 = vadd.f32 1e-05, %v233_v11 }
 0x142   : > { %573 = vrsqrt.f32 %v234_v12 }
 0x14c   : > { %v574_v13 = vpop.eup %573 }
 0x14d   : > { %v236_v15 = vmul.f32 %v574_v13, %v228_v4 }
 0x14f   : > { %v244_v17 = vmul.f32 %v482_v14, %v236_v15 }
 0x151   : > { %v252_v18 = vadd.f32 %v483_v16, %v244_v17 }
 0x153   : > { %v253_v19 = vpack.c.bf16 %v252_v18, %v252_v18 }
 0x155   : > { %510 = vmatmul.mubr.msk.bf16.vlgmr.msra.gmra.mrb[0].mxu0 %vm222_vm0, %v253_v19 }
 0x228   : > { %v307_v24 = vpop.f32.mrb[0].mxu0 }
 0x229   : > { %321 = vrot.lane.b32.xlu1 %v307_v24, %s645_s10  ;;  %v511_v25 = vpop.f32.mrb[1].mxu0  ;;  %v487_v28 = vmul.f32 -1.442695, %v307_v24 }
 0x22a   : > { %v310_v26 = vpop.f32.mrb[2].mxu0 }
 0x22b   : > { %v512_v27 = vpop.f32.mrb[3].mxu0  ;;  %575 = vpow2.f32 %v487_v28 }
 0x235   : > { %v576_v29 = vpop.eup %575 }
 0x236   : > { %v316_v30 = vadd.f32 1.0, %v576_v29 }
 0x238   : > { %577 = vrcp.f32 %v316_v30 }
 0x242   : > { %v578_v31 = vpop.eup %577 }
 0x243   : > { %v319_v32 = vmul.f32 %v578_v31, %v307_v24 }
 0x29b   : > { %v322_v33 = vpop.permute.xlu1 %321 }
 0x29c   : > { %v324_v34 = vmul.f32 %v322_v33, %v319_v32 }
 0x29e   : > { %v325_v35 = vpack.c.bf16 %v324_v34, %v324_v34 }
 0x2a0   : > { %522 = vmatmul.mubr.msk.bf16.vlgmr.msra.gmra.mrb[0].mxu1 %vm358_vm2, %v325_v35 }
 0x373   : > { %v396_v36 = vpop.f32.mrb[0].mxu1 }
 0x374   : > { %402 = vst.msk [vmem:[%s215_s14] sm:$0xff] %vm222_vm0, %v396_v36  ;;  %v523_v37 = vpop.f32.mrb[1].mxu1 }
 0x375   : > { %v399_v38 = vpop.f32.mrb[2].mxu1 }
 0x376   : > { %592 = shalt.err (!%p589_p3)
}
 0x377   : > { %s593_s7 = scalar_lea.hbm %s762_s23, 128  ;;  %s597_s10 = scalar_lea.hbm %s810_s5, 256 }
 0x378   : > { %p594_p4 = scmp.ne.s32.totalorder %s762_s23, %s593_s7  ;;  %p598_p9 = scmp.lt.u32.totalorder %s762_s23, %s810_s5 }
 0x379   : > { %p599_p10 = scmp.lt.u32.totalorder %s597_s10, %s593_s7  ;;  %p601_p12 = scmp.lt.u32.totalorder %s593_s7, %s762_s23 }
 0x37a   : > { %p595_p7 = pnand %p594_p4, %p715_p5 }
 0x37b   : > { %p600_p11 = por %p599_p10, %p598_p9 }
 0x37c   : > { %p596_p8 = pneg %p595_p7 }
 0x37d   : > { %p602_p13 = por %p601_p12, %p600_p11 }
 0x37f   : > { %p603_p0 = pnand %p602_p13, %p596_p8 }
 0x381   : > { %606 = shalt.err (!%p603_p0)
}
 0x382   : > { %525 = dma.vmem_to_hbm [thread:$0]  (%p715_p5), %s764_s15, 128, %s762_s23, %s404_s25   ;;  %v524_v39 = vpop.f32.mrb[3].mxu1 }
 0x383 PF: > { %p531_p1 = scmp.ge.s32.totalorder %s641_s21, 2  ;;  %s429_s13 = sand.u32 1, %s629_s18  }
 0x384   : > { %s430_s14 = scalar_lea.sflag [#allocation3], %s429_s13 }
 0x385   : > { %p528_p2 = pnand %p531_p1, %p719_p6 }
 0x387   : > { %624 = dma.done.wait (!%p528_p2), %s430_s14, 128  }
 0x388   : > { %626 = vsyncadd (!%p528_p2), %s430_s14, 4294967168  ;;  %p15_p3 = scmp.ge.s32.totalorder %s702_s24, 4   ;;  %s813_s18 = smov %s633_s19 }
 0x389   : > { %s814_s19 = smov %s637_s20  ;;  %s815_s20 = smov %s713_s27 }
 0x38a   : > { %s816_s21 = smov %s702_s24  ;;  %17 = sbr.rel (!%p15_p3) target bundleno = 3 (0x3), region = 75 }
 0x391   :  { %435 = vsyncpa [#allocation3], 1 }
 0x392   :  { %437 = vsyncpa [#allocation3 + $0x1], 1 }

</bundles_post_ra>
